<compile_context>
chip_gen: v5e
topology: v5e:2x2
jax: 0.10.0
libtpu: 0.0.40
codegen_flags: <defaults>
</compile_context>

<pallas_src>
import functools

import jax
import jax.numpy as jnp
from jax import lax
from jax.experimental import pallas as pl
from jax.experimental.pallas import tpu as pltpu


def _round_up(x: int, m: int) -> int:
    return ((x + m - 1) // m) * m


def _vmem_capacity_bytes() -> int:
    """Physical VMEM per core; conservative v7x default if the query fails."""
    try:
        info = pltpu.get_tpu_info()
        cap = getattr(info, "vmem_capacity_bytes", None)
        if cap:
            return int(cap)
    except Exception:
        pass
    return 64 << 20


def _margin_mse_kernel(q_ref, p_ref, n_ref, lbl_ref, part_ref, *,
                       scale: float, rows_total: int, tile_rows: int,
                       needs_mask: bool):
    # Upcast to f32 inside the kernel (accumulate in f32 even for bf16 inputs).
    q = q_ref[...].astype(jnp.float32)
    pn = p_ref[...].astype(jnp.float32) - n_ref[...].astype(jnp.float32)
    lbl = lbl_ref[...].astype(jnp.float32)                       # (TB, 1)

    # Fused margin: scale * sum(q * (p - n), -1)  ==  scores_pos - scores_neg
    margin = jnp.sum(q * pn, axis=-1, keepdims=True) * scale     # (TB, 1)
    diff = margin - lbl
    sq = diff * diff                                             # (TB, 1)

    if needs_mask:
        # Ragged last tile: out-of-bounds rows hold unspecified data — select
        # them out (jnp.where, not multiply, so NaN garbage cannot leak).
        rows_valid = rows_total - pl.program_id(0) * tile_rows
        row_ids = lax.broadcasted_iota(jnp.int32, (tile_rows, 1), 0)
        sq = jnp.where(row_ids < rows_valid, sq, 0.0)

    # One lane/sublane-dense partial-sum block per grid step (parallel-safe).
    part_ref[...] = jnp.full(part_ref.shape, jnp.sum(sq), dtype=jnp.float32)


def margin_mse_loss(embeddings_query, embeddings_pos, embeddings_neg, labels,
                    scale: float = 1.0, block_rows: int | None = None):
    """Pallas implementation of MarginMSELoss.forward (similarity_fct='dot')."""
    B, D = embeddings_query.shape
    itemsize = jnp.dtype(embeddings_query.dtype).itemsize
    lbl_itemsize = jnp.dtype(labels.dtype).itemsize
    labels2d = labels.reshape(B, 1)

    # Native sublane packing: f32 -> 8 rows, bf16 -> 16, int8/fp8 -> 32.
    sublane = 8 * max(1, 4 // itemsize)

    # Generation-aware streaming budget (3 streams x 2 buffers).
    vmem_cap = _vmem_capacity_bytes()
    big_vmem = vmem_cap >= (100 << 20)           # v5e / v6e (128 MiB physical)
    budget = (48 << 20) if big_vmem else (24 << 20)

    # ---- row tile from a per-stream byte target (amortize grid-step cost) ---
    if block_rows is None:
        row_bytes = D * itemsize
        tb = (budget // 6 // row_bytes) // sublane * sublane
        tb = max(sublane, min(tb, 4096))
    else:
        tb = int(block_rows)
        assert tb % sublane == 0, (
            f"row tile must be a multiple of {sublane} for this dtype")
    tb = min(tb, _round_up(B, sublane))
    num_tiles = pl.cdiv(B, tb)
    needs_mask = (B % tb) != 0                   # ragged last tile -> in-kernel mask

    kernel = functools.partial(
        _margin_mse_kernel, scale=float(scale), rows_total=B, tile_rows=tb,
        needs_mask=needs_mask)

    # Double-buffered streams + headroom for in-kernel f32 elementwise temps.
    stream_bytes = 3 * 2 * tb * D * itemsize + 2 * tb * lbl_itemsize
    temp_bytes = 3 * tb * D * 4
    ceiling = (100 << 20) if big_vmem else (48 << 20)
    vmem_limit = int(min(max(stream_bytes + temp_bytes + (2 << 20), 16 << 20),
                         ceiling))

    cost = pl.CostEstimate(
        flops=4 * B * D,
        transcendentals=0,
        bytes_accessed=(3 * B * D * itemsize + B * lbl_itemsize
                        + num_tiles * 8 * 128 * 4),
    )

    partials = pl.pallas_call(
        kernel,
        out_shape=jax.ShapeDtypeStruct((num_tiles, 8, 128), jnp.float32),
        grid_spec=pltpu.PrefetchScalarGridSpec(
            num_scalar_prefetch=0,
            grid=(num_tiles,),
            in_specs=[
                pl.BlockSpec((tb, D), lambda i: (i, 0)),   # query
                pl.BlockSpec((tb, D), lambda i: (i, 0)),   # positive
                pl.BlockSpec((tb, D), lambda i: (i, 0)),   # negative
                pl.BlockSpec((tb, 1), lambda i: (i, 0)),   # labels
            ],
            out_specs=pl.BlockSpec((1, 8, 128), lambda i: (i, 0, 0)),
        ),
        compiler_params=pltpu.CompilerParams(
            dimension_semantics=("parallel",),
            vmem_limit_bytes=vmem_limit,
        ),
        cost_estimate=cost,
    )(embeddings_query, embeddings_pos, embeddings_neg, labels2d)

    # Tiny final reduction over the per-tile partial sums.
    return jnp.sum(partials[:, 0, 0]) * (1.0 / float(B))


def margin_mse_loss_ref(q, p, n, labels, scale: float = 1.0):
    """Pure-JAX reference mirroring the PyTorch module."""
    q = q.astype(jnp.float32)
    p = p.astype(jnp.float32)
    n = n.astype(jnp.float32)
    scores_pos = jnp.sum(q * p, axis=-1) * scale
    scores_neg = jnp.sum(q * n, axis=-1) * scale
    margin_pred = scores_pos - scores_neg
    return jnp.mean((margin_pred - labels.astype(jnp.float32)) ** 2)


if __name__ == "__main__":
    # --- test 1: toy shapes matching the module's intent (batch=8, hidden=32)
    k_q, k_p, k_n, k_l = jax.random.split(jax.random.PRNGKey(0), 4)
    B, D = 8, 32
    q = jax.random.normal(k_q, (B, D), dtype=jnp.float32)
    p = jax.random.normal(k_p, (B, D), dtype=jnp.float32)
    n = jax.random.normal(k_n, (B, D), dtype=jnp.float32)
    labels = jax.random.normal(k_l, (B,), dtype=jnp.float32)   # teacher margins

    loss = jax.block_until_ready(margin_mse_loss(q, p, n, labels, scale=1.0))
    ref = margin_mse_loss_ref(q, p, n, labels, scale=1.0)
    assert jnp.allclose(loss, ref, atol=1e-5, rtol=1e-5), (loss, ref)

    # --- test 2: multi-tile + ragged last tile (in-kernel mask, no padding)
    k_q2, k_p2, k_n2, k_l2 = jax.random.split(jax.random.PRNGKey(1), 4)
    B2, D2 = 20, 256
    q2 = jax.random.normal(k_q2, (B2, D2), dtype=jnp.float32)
    p2 = jax.random.normal(k_p2, (B2, D2), dtype=jnp.float32)
    n2 = jax.random.normal(k_n2, (B2, D2), dtype=jnp.float32)
    labels2 = jax.random.normal(k_l2, (B2,), dtype=jnp.float32)

    loss2 = jax.block_until_ready(
        margin_mse_loss(q2, p2, n2, labels2, scale=2.0, block_rows=8))
    ref2 = margin_mse_loss_ref(q2, p2, n2, labels2, scale=2.0)
    assert jnp.allclose(loss2, ref2, atol=1e-4, rtol=1e-4), (loss2, ref2)

    # --- test 3: bf16 inputs (sublane=16 alignment) with a ragged tile
    k_q3, k_p3, k_n3, k_l3 = jax.random.split(jax.random.PRNGKey(2), 4)
    B3, D3 = 19, 128
    q3 = jax.random.normal(k_q3, (B3, D3), dtype=jnp.bfloat16)
    p3 = jax.random.normal(k_p3, (B3, D3), dtype=jnp.bfloat16)
    n3 = jax.random.normal(k_n3, (B3, D3), dtype=jnp.bfloat16)
    labels3 = jax.random.normal(k_l3, (B3,), dtype=jnp.float32)

    loss3 = jax.block_until_ready(margin_mse_loss(q3, p3, n3, labels3, scale=1.0))
    ref3 = margin_mse_loss_ref(q3, p3, n3, labels3, scale=1.0)
    assert jnp.allclose(loss3, ref3, atol=1e-3, rtol=1e-3), (loss3, ref3)

    print("KERNEL_OK")
</pallas_src>

<mosaic_0001>
module attributes {stable_mosaic.version = 11 : i64} {
  func.func @_margin_mse_kernel(%arg0: i32, %arg1: memref<8x32xf32, #tpu.memory_space<vmem>>, %arg2: memref<8x32xf32, #tpu.memory_space<vmem>>, %arg3: memref<8x32xf32, #tpu.memory_space<vmem>>, %arg4: memref<8x1xf32, #tpu.memory_space<vmem>>, %arg5: memref<1x8x128xf32, #tpu.memory_space<vmem>>) attributes {dimension_semantics = [#tpu.dimension_semantics<parallel>], iteration_bounds = array<i64: 1>, scalar_prefetch = 0 : i64, scratch_operands = 0 : i64, tpu.core_type = #tpu.core_type<tc>, window_params = [{transform_indices = @transform_0, window_bounds = array<i64: 8, 32>}, {transform_indices = @transform_1, window_bounds = array<i64: 8, 32>}, {transform_indices = @transform_2, window_bounds = array<i64: 8, 32>}, {transform_indices = @transform_3, window_bounds = array<i64: 8, 1>}, {transform_indices = @transform_4, window_bounds = array<i64: 1, 8, 128>}]} {
    %c0 = arith.constant 0 : index
    %c0_0 = arith.constant 0 : index
    %0 = vector.load %arg1[%c0, %c0_0] : memref<8x32xf32, #tpu.memory_space<vmem>>, vector<8x32xf32>
    %c0_1 = arith.constant 0 : index
    %c0_2 = arith.constant 0 : index
    %1 = vector.load %arg2[%c0_1, %c0_2] : memref<8x32xf32, #tpu.memory_space<vmem>>, vector<8x32xf32>
    %c0_3 = arith.constant 0 : index
    %c0_4 = arith.constant 0 : index
    %2 = vector.load %arg3[%c0_3, %c0_4] : memref<8x32xf32, #tpu.memory_space<vmem>>, vector<8x32xf32>
    %3 = arith.subf %1, %2 : vector<8x32xf32>
    %c0_5 = arith.constant 0 : index
    %c0_6 = arith.constant 0 : index
    %4 = vector.load %arg4[%c0_5, %c0_6] : memref<8x1xf32, #tpu.memory_space<vmem>>, vector<8x1xf32>
    %5 = arith.mulf %0, %3 : vector<8x32xf32>
    %cst = arith.constant dense<0.000000e+00> : vector<8xf32>
    %6 = vector.multi_reduction <add>, %5, %cst [1] : vector<8x32xf32> to vector<8xf32>
    %7 = vector.shape_cast %6 : vector<8xf32> to vector<8x1xf32>
    %cst_7 = arith.constant 1.000000e+00 : f32
    %8 = vector.broadcast %cst_7 : f32 to vector<8x1xf32>
    %9 = arith.mulf %7, %8 : vector<8x1xf32>
    %10 = arith.subf %9, %4 : vector<8x1xf32>
    %11 = arith.mulf %10, %10 : vector<8x1xf32>
    %12 = vector.shape_cast %11 : vector<8x1xf32> to vector<1x8x1xf32>
    %cst_8 = arith.constant dense<0.000000e+00> : vector<1xf32>
    %13 = vector.multi_reduction <add>, %12, %cst_8 [1, 2] : vector<1x8x1xf32> to vector<1xf32>
    %14 = vector.shape_cast %13 : vector<1xf32> to vector<1x1x1xf32>
    %15 = vector.extract %14[0, 0, 0] : f32 from vector<1x1x1xf32>
    %16 = vector.broadcast %15 : f32 to vector<1x8x128xf32>
    %c0_9 = arith.constant 0 : index
    %c0_10 = arith.constant 0 : index
    %c0_11 = arith.constant 0 : index
    %17 = vector.load %arg5[%c0_9, %c0_10, %c0_11] : memref<1x8x128xf32, #tpu.memory_space<vmem>>, vector<1x8x128xf32>
    tpu.vector_store %arg5[%c0_9, %c0_10, %c0_11], %16 {strides = array<i32>} : memref<1x8x128xf32, #tpu.memory_space<vmem>>, vector<1x8x128xf32>,
    return
  }
  func.func @transform_0(%arg0: i32) -> (i32, i32) {
    %c0_i32 = arith.constant 0 : i32
    %c0_i32_0 = arith.constant 0 : i32
    return %arg0, %c0_i32 : i32, i32
  }
  func.func @transform_1(%arg0: i32) -> (i32, i32) {
    %c0_i32 = arith.constant 0 : i32
    %c0_i32_0 = arith.constant 0 : i32
    return %arg0, %c0_i32 : i32, i32
  }
  func.func @transform_2(%arg0: i32) -> (i32, i32) {
    %c0_i32 = arith.constant 0 : i32
    %c0_i32_0 = arith.constant 0 : i32
    return %arg0, %c0_i32 : i32, i32
  }
  func.func @transform_3(%arg0: i32) -> (i32, i32) {
    %c0_i32 = arith.constant 0 : i32
    %c0_i32_0 = arith.constant 0 : i32
    return %arg0, %c0_i32 : i32, i32
  }
  func.func @transform_4(%arg0: i32) -> (i32, i32, i32) {
    %c0_i32 = arith.constant 0 : i32
    %c0_i32_0 = arith.constant 0 : i32
    %c0_i32_1 = arith.constant 0 : i32
    return %arg0, %c0_i32, %c0_i32_0 : i32, i32, i32
  }
}

</mosaic_0001>

<bundles_post_ra>
// kernel: tpu_custom_call.1
= control target key start
LH: loop header
LB: loop body
LE: loop exit
PB: predicated region body
PF: predicated region fallthrough
CT: control target
= control target key end

     0   :  { %9 = vsyncpa [#allocation3], 0  ;;  %s215_s0 = inlined_call_operand.vmem [shape: f32[8,32], index: 0, kind: input, shape index: {}]   ;;  %s216_s1 = inlined_call_operand.hbm [shape: f32[8,32], index: 1, kind: input, shape index: {}]   ;;  %s217_s2 = inlined_call_operand.hbm [shape: f32[8,32], index: 2, kind: input, shape index: {}]   ;;  %s218_s3 = inlined_call_operand.vmem [shape: f32[8,1], index: 3, kind: input, shape index: {}]   ;;  %s219_s4 = inlined_call_operand.hbm [shape: f32[1,8,128], index: 4, kind: output, shape index: {}]  }
   0x1   :  { %10 = vsyncpa [#allocation6], 0 }
   0x2   :  { %11 = vsyncpa [#allocation4], 0  ;;  %s19_s17 = sshll.u32 %s216_s1, 4  ;;  %s172_s18 = smov [#allocation2]   ;;  %s20_s17 = int_to_ptr.hbm [resolvable:$true] %s19_s17 }
   0x3   :  { %s21_s19 = sshll.u32 %s172_s18, 4  ;;  %s30_s22 = sshll.u32 %s217_s2, 4  ;;  %s22_s19 = int_to_ptr.vmem [resolvable:$true] %s21_s19  ;;  %s31_s22 = int_to_ptr.hbm [resolvable:$true] %s30_s22 }
   0x4   :  { %24 = dma.hbm_to_vmem [thread:$0]  %s20_s17, 128, %s22_s19, [#allocation3]  }
   0x5   :  { %s173_s23 = smov [#allocation5]  }
   0x6   :  { %s32_s24 = sshll.u32 %s173_s23, 4  ;;  %s33_s24 = int_to_ptr.vmem [resolvable:$true] %s32_s24 }
   0x7   :  { %35 = dma.hbm_to_vmem [thread:$0]  %s31_s22, 128, %s33_s24, [#allocation6]  }
   0x8   :  { %166 = dma.done.wait [#allocation3], 128  }
   0x9   :  { %167 = vsyncadd [#allocation3], 4294967168 }
   0xa   :  { %168 = dma.done.wait [#allocation6], 128  }
   0xb   :  { %169 = vsyncadd [#allocation6], 4294967168  ;;  %v46_v0 = vld [vmem:[%s215_s0] sm:$0xff]  ;;  %v48_v2 = vld [vmem:[#allocation5] sm:$0xff]  ;;  %vm52_vm0 = vcmask 261120   ;;  %vm58_vm1 = vcmask 7168  }
   0xc   :  { %v47_v1 = vld [vmem:[#allocation2] sm:$0xff]  ;;  %s174_s0 = smov [#allocation7]  }
   0xd   :  { %v49_v3 = vsub.f32 %v47_v1, %v48_v2  ;;  %v50_v6 = vld [vmem:[%s218_s3] sm:$0xff]  ;;  %s76_s27 = sshll.u32 %s174_s0, 4  ;;  %s78_s3 = sshll.u32 %s219_s4, 4  ;;  %s77_s27 = int_to_ptr.vmem [resolvable:$true] %s76_s27  ;;  %s79_s3 = int_to_ptr.hbm [resolvable:$true] %s78_s3 }
   0xf   :  { %v51_v4 = vmul.f32 %v49_v3, %v46_v0 }
  0x11   :  { %v53_v5 = vsel %vm52_vm0, %v51_v4, 0.0 }
  0x12   :  { %54 = vadd.xlane.f32.xlu0 %v53_v5 }
  0x85   :  { %v55_v7 = vpop.xlane.xlu0 %54 }
  0x86   :  { %v56_v8 = vsub.f32 %v55_v7, %v50_v6 }
  0x88   :  { %v57_v9 = vmul.f32 %v56_v8, %v56_v8 }
  0x8a   :  { %v59_v10 = vsel %vm58_vm1, %v57_v9, 0.0 }
  0x8b   :  { %60 = vadd.xlane.f32.xlu0 %v59_v10 }
  0xfe   :  { %v61_v11 = vpop.xlane.xlu0 %60 }
  0xff   :  { %v62_v12 = vrot.slane %v61_v11, 4 }
 0x101   :  { %v63_v13 = vadd.f32 %v62_v12, %v61_v11 }
 0x103   :  { %v64_v14 = vrot.slane %v63_v13, 2 }
 0x105   :  { %v65_v15 = vadd.f32 %v64_v14, %v63_v13 }
 0x107   :  { %v66_v16 = vrot.slane %v65_v15, 1 }
 0x109   :  { %v67_v17 = vadd.f32 %v66_v16, %v65_v15 }
 0x10b   :  { %89 = vpush %v67_v17 }
 0x13c   :  { %s90_s30 = spop %89 }
 0x13d   :  { %v69_v18 = vstv %s90_s30 }
 0x13e   :  { %70 = vst [vmem:[#allocation7] sm:$0xff] %v69_v18 }
 0x13f   :  { %81 = dma.vmem_to_hbm [thread:$0]  %s77_s27, 128, %s79_s3, [#allocation4]  }
 0x140   :  { %170 = dma.done.wait [#allocation4], 128  }
 0x141   :  { %171 = vsyncadd [#allocation4], 4294967168 }
 0x142   :  { %86 = vsyncpa [#allocation3], 1 }
 0x143   :  { %87 = vsyncpa [#allocation6], 1 }
 0x144   :  { %88 = vsyncpa [#allocation4], 1 }

</bundles_post_ra>
